<compile_context>
chip_gen: v6e
topology: v6e:2x2x1
jax: 0.10.0
libtpu: 0.0.40
codegen_flags: <defaults>
</compile_context>

<pallas_src>
import numpy as np

import jax
import jax.numpy as jnp
from jax.experimental import pallas as pl
from jax.experimental.pallas import tpu as pltpu


def _round_up(x, m):
    return (x + m - 1) // m * m


def birvae_kernel(x_ref, w1_ref, b1_ref, wmu_ref, bmu_ref, eps_ref,
                  wd1_ref, bd1_ref, wrec_ref, brec_ref,
                  out_ref, z_ref):
    """One batch tile of the whole BIRVAE forward (everything VMEM-resident).

    Encoder:  h1 = relu(x @ W1 + b1);  mu = h1 @ Wmu + bmu
    Reparam:  z  = mu + eps            (eps ~ N(0, set_var), drawn host-side)
    Decoder:  h2 = relu(z @ Wd1 + bd1); out = sigmoid(h2 @ Wrec + brec)

    Weights are bf16 (MXU-native, half the HBM traffic); all matmuls accumulate in
    f32; all elementwise math stays in f32 (safe on v5e which has no bf16 VPU/EUP).
    """
    x = x_ref[...]                                                   # (TB, Dp) bf16

    # Encoder
    h1 = jnp.dot(x, w1_ref[...], preferred_element_type=jnp.float32) + b1_ref[...]
    h1 = jnp.maximum(h1, 0.0)                                        # (TB, Hp) f32
    mu = jnp.dot(h1.astype(jnp.bfloat16), wmu_ref[...],
                 preferred_element_type=jnp.float32) + bmu_ref[...]  # (TB, Zp) f32

    # Reparameterization trick: z = mu + eps
    z = mu + eps_ref[...]
    z_ref[...] = z                                                   # lane-dense (Zp=128k)

    # Decoder
    h2 = jnp.dot(z.astype(jnp.bfloat16), wd1_ref[...],
                 preferred_element_type=jnp.float32) + bd1_ref[...]
    h2 = jnp.maximum(h2, 0.0)                                        # (TB, Hp) f32
    logits = jnp.dot(h2.astype(jnp.bfloat16), wrec_ref[...],
                     preferred_element_type=jnp.float32) + brec_ref[...]
    out_ref[...] = jax.nn.sigmoid(logits)                            # (TB, Dp) f32


def prepare_params(params, image_shape, z_dim, hidden_dim=400):
    """One-time prep (not per-forward): zero-pad every dim to a lane/sublane-aligned
    size and cast weights to bf16. Zero padding keeps the math exactly equivalent."""
    D = int(np.prod(image_shape))
    Dp = _round_up(D, 128)
    Hp = _round_up(hidden_dim, 128)      # 400 -> 512
    Zp = _round_up(z_dim, 128)           # 20  -> 128

    def pad2(a, rows, cols, dtype):
        a = jnp.asarray(a, jnp.float32)
        a = jnp.pad(a, ((0, rows - a.shape[0]), (0, cols - a.shape[1])))
        return a.astype(dtype)

    return dict(
        w1=pad2(params["w1"], Dp, Hp, jnp.bfloat16),
        b1=pad2(params["b1"], 1, Hp, jnp.float32),
        wmu=pad2(params["wmu"], Hp, Zp, jnp.bfloat16),
        bmu=pad2(params["bmu"], 1, Zp, jnp.float32),
        wd1=pad2(params["wd1"], Zp, Hp, jnp.bfloat16),
        bd1=pad2(params["bd1"], 1, Hp, jnp.float32),
        wrec=pad2(params["wrec"], Hp, Dp, jnp.bfloat16),
        brec=pad2(params["brec"], 1, Dp, jnp.float32),
        dims=(D, Dp, Hp, z_dim, Zp),
    )


def birvae_forward(x_nchw, prepped, eps):
    """x_nchw: (B, C, H, W) float32. Returns (out_img (B,C,H,W) f32, z (B,Z) f32)."""
    D, Dp, Hp, Z, Zp = prepped["dims"]
    B = x_nchw.shape[0]
    image_shape = x_nchw.shape[1:]
    assert int(np.prod(image_shape)) == D

    # Batch tile: at least one f32 sublane tile (8 rows), at most one MXU pass (256).
    TB = min(_round_up(B, 8), 256)
    Bp = _round_up(B, TB)

    x_flat = x_nchw.reshape(B, D)                                    # glue: flatten NCHW
    x_pad = jnp.pad(x_flat, ((0, Bp - B), (0, Dp - D))).astype(jnp.bfloat16)
    eps_pad = jnp.pad(eps.astype(jnp.float32), ((0, Bp - B), (0, Zp - Z)))

    def row_spec(shape):   # batch-tiled operands
        return pl.BlockSpec(shape, lambda i: (i, 0))

    def full_spec(shape):  # weights/biases: same block every step -> VMEM-resident
        return pl.BlockSpec(shape, lambda i: (0, 0))

    out_pad, z_pad = pl.pallas_call(
        birvae_kernel,
        out_shape=(jax.ShapeDtypeStruct((Bp, Dp), jnp.float32),
                   jax.ShapeDtypeStruct((Bp, Zp), jnp.float32)),
        grid=(Bp // TB,),
        in_specs=[
            row_spec((TB, Dp)),     # x
            full_spec((Dp, Hp)),    # w1
            full_spec((1, Hp)),     # b1
            full_spec((Hp, Zp)),    # wmu
            full_spec((1, Zp)),     # bmu
            row_spec((TB, Zp)),     # eps
            full_spec((Zp, Hp)),    # wd1
            full_spec((1, Hp)),     # bd1
            full_spec((Hp, Dp)),    # wrec
            full_spec((1, Dp)),     # brec
        ],
        out_specs=(row_spec((TB, Dp)), row_spec((TB, Zp))),
        compiler_params=pltpu.CompilerParams(
            dimension_semantics=("parallel",)),   # batch tiles shard across v7x's 2 TCs
    )(x_pad, prepped["w1"], prepped["b1"], prepped["wmu"], prepped["bmu"],
      eps_pad, prepped["wd1"], prepped["bd1"], prepped["wrec"], prepped["brec"])

    out_img = out_pad[:B, :D].reshape((B,) + image_shape)
    z = z_pad[:B, :Z]
    return out_img, z


def init_params(key, image_shape, z_dim, hidden_dim=400):
    """Synthetic init matching the PyTorch module's shapes.
    Weights stored as (in, out); PyTorch Linear default init: U(-1/sqrt(in), 1/sqrt(in))."""
    D = int(np.prod(image_shape))

    def linear(key, fan_in, fan_out):
        kw, kb = jax.random.split(key)
        bound = 1.0 / np.sqrt(fan_in)
        w = jax.random.uniform(kw, (fan_in, fan_out), jnp.float32, -bound, bound)
        b = jax.random.uniform(kb, (1, fan_out), jnp.float32, -bound, bound)
        return w, b

    k1, k2, k3, k4 = jax.random.split(key, 4)
    w1, b1 = linear(k1, D, hidden_dim)          # encoder.linear
    wmu, bmu = linear(k2, hidden_dim, z_dim)    # encoder.mu
    wd1, bd1 = linear(k3, z_dim, hidden_dim)    # decoder.linear
    wrec, brec = linear(k4, hidden_dim, D)      # decoder.recon
    return dict(w1=w1, b1=b1, wmu=wmu, bmu=bmu,
                wd1=wd1, bd1=bd1, wrec=wrec, brec=brec)


if __name__ == "__main__":
    # Small shapes consistent with the module's forward.
    B = 2
    image_shape = (1, 16, 16)            # (C, H, W), prod = 256
    z_dim = 20                           # module default
    I = 13.3
    # NOTE: the PyTorch module passes set_var directly as numpy's `scale` (std dev);
    # we replicate that exactly. TODO(synk): confirm whether set_var was meant as a
    # variance (eps std = sqrt(set_var)) in the original BIR-VAE formulation.
    set_var = 1.0 / 4.0 ** (I / z_dim)

    key = jax.random.PRNGKey(0)
    k_params, k_x, k_eps = jax.random.split(key, 3)

    params = init_params(k_params, image_shape, z_dim)
    prepped = prepare_params(params, image_shape, z_dim)

    x = jax.random.uniform(k_x, (B,) + image_shape, jnp.float32)              # "image"
    # eps ~ N(0, set_var) drawn deterministically host-side (glue, like np.random in torch)
    eps = set_var * jax.random.normal(k_eps, (B, z_dim), jnp.float32)

    out_img, z = birvae_forward(x, prepped, eps)
    out_img = jax.block_until_ready(out_img)
    z = jax.block_until_ready(z)

    # ---- Reference 1: mirror of kernel math (bf16 weights, f32 accumulation). ----
    def bdot(a, b):
        return jnp.dot(a.astype(jnp.bfloat16), b, preferred_element_type=jnp.float32)

    x_flat = x.reshape(B, -1)
    w1b = params["w1"].astype(jnp.bfloat16)
    wmub = params["wmu"].astype(jnp.bfloat16)
    wd1b = params["wd1"].astype(jnp.bfloat16)
    wrecb = params["wrec"].astype(jnp.bfloat16)

    h1 = jnp.maximum(bdot(x_flat, w1b) + params["b1"], 0.0)
    mu = bdot(h1, wmub) + params["bmu"]
    z_ref = mu + eps
    h2 = jnp.maximum(bdot(z_ref, wd1b) + params["bd1"], 0.0)
    out_ref = jax.nn.sigmoid(bdot(h2, wrecb) + params["brec"]).reshape((B,) + image_shape)

    assert out_img.shape == (B,) + image_shape and out_img.dtype == jnp.float32
    assert z.shape == (B, z_dim) and z.dtype == jnp.float32
    np.testing.assert_allclose(np.asarray(out_img), np.asarray(out_ref), rtol=1e-4, atol=1e-4)
    np.testing.assert_allclose(np.asarray(z), np.asarray(z_ref), rtol=1e-4, atol=1e-4)

    # ---- Reference 2: full-f32 module semantics (loose tol, quantization-only error). ----
    h1f = jnp.maximum(x_flat @ params["w1"] + params["b1"], 0.0)
    muf = h1f @ params["wmu"] + params["bmu"]
    zf = muf + eps
    h2f = jnp.maximum(zf @ params["wd1"] + params["bd1"], 0.0)
    outf = jax.nn.sigmoid(h2f @ params["wrec"] + params["brec"]).reshape((B,) + image_shape)
    np.testing.assert_allclose(np.asarray(out_img), np.asarray(outf), atol=5e-2)
    np.testing.assert_allclose(np.asarray(z), np.asarray(zf), atol=5e-2)

    print("KERNEL_OK")
</pallas_src>

<mosaic_0001>
module attributes {stable_mosaic.version = 11 : i64} {
  func.func @birvae_kernel(%arg0: i32, %arg1: memref<8x256xbf16, #tpu.memory_space<vmem>>, %arg2: memref<256x512xbf16, #tpu.memory_space<vmem>>, %arg3: memref<1x512xf32, #tpu.memory_space<vmem>>, %arg4: memref<512x128xbf16, #tpu.memory_space<vmem>>, %arg5: memref<1x128xf32, #tpu.memory_space<vmem>>, %arg6: memref<8x128xf32, #tpu.memory_space<vmem>>, %arg7: memref<128x512xbf16, #tpu.memory_space<vmem>>, %arg8: memref<1x512xf32, #tpu.memory_space<vmem>>, %arg9: memref<512x256xbf16, #tpu.memory_space<vmem>>, %arg10: memref<1x256xf32, #tpu.memory_space<vmem>>, %arg11: memref<8x256xf32, #tpu.memory_space<vmem>>, %arg12: memref<8x128xf32, #tpu.memory_space<vmem>>) attributes {dimension_semantics = [#tpu.dimension_semantics<parallel>], iteration_bounds = array<i64: 1>, scalar_prefetch = 0 : i64, scratch_operands = 0 : i64, tpu.core_type = #tpu.core_type<tc>, window_params = [{transform_indices = @transform_0, window_bounds = array<i64: 8, 256>}, {pipeline_mode = #tpu.pipeline_mode<synchronous>, transform_indices = @transform_1, window_bounds = array<i64: 256, 512>}, {pipeline_mode = #tpu.pipeline_mode<synchronous>, transform_indices = @transform_2, window_bounds = array<i64: 1, 512>}, {pipeline_mode = #tpu.pipeline_mode<synchronous>, transform_indices = @transform_3, window_bounds = array<i64: 512, 128>}, {pipeline_mode = #tpu.pipeline_mode<synchronous>, transform_indices = @transform_4, window_bounds = array<i64: 1, 128>}, {transform_indices = @transform_5, window_bounds = array<i64: 8, 128>}, {pipeline_mode = #tpu.pipeline_mode<synchronous>, transform_indices = @transform_6, window_bounds = array<i64: 128, 512>}, {pipeline_mode = #tpu.pipeline_mode<synchronous>, transform_indices = @transform_7, window_bounds = array<i64: 1, 512>}, {pipeline_mode = #tpu.pipeline_mode<synchronous>, transform_indices = @transform_8, window_bounds = array<i64: 512, 256>}, {pipeline_mode = #tpu.pipeline_mode<synchronous>, transform_indices = @transform_9, window_bounds = array<i64: 1, 256>}, {transform_indices = @transform_10, window_bounds = array<i64: 8, 256>}, {transform_indices = @transform_11, window_bounds = array<i64: 8, 128>}]} {
    %c0 = arith.constant 0 : index
    %c0_0 = arith.constant 0 : index
    %0 = vector.load %arg1[%c0, %c0_0] : memref<8x256xbf16, #tpu.memory_space<vmem>>, vector<8x256xbf16>
    %c0_1 = arith.constant 0 : index
    %c0_2 = arith.constant 0 : index
    %1 = vector.load %arg2[%c0_1, %c0_2] : memref<256x512xbf16, #tpu.memory_space<vmem>>, vector<256x512xbf16>
    %cst = arith.constant dense<0.000000e+00> : vector<8x512xf32>
    %2 = tpu.matmul %0, %1, %cst {dimension_numbers = #tpu.dot_dimension_numbers<[1], [0], [0], [1], [0, 0, 1, 1], [], []>} : vector<8x256xbf16>, vector<256x512xbf16>, vector<8x512xf32> -> vector<8x512xf32>
    %c0_3 = arith.constant 0 : index
    %c0_4 = arith.constant 0 : index
    %3 = vector.load %arg3[%c0_3, %c0_4] : memref<1x512xf32, #tpu.memory_space<vmem>>, vector<1x512xf32>
    %4 = vector.broadcast %3 : vector<1x512xf32> to vector<8x512xf32>
    %5 = arith.addf %2, %4 : vector<8x512xf32>
    %cst_5 = arith.constant 0.000000e+00 : f32
    %6 = vector.broadcast %cst_5 : f32 to vector<8x512xf32>
    %7 = arith.maximumf %5, %6 : vector<8x512xf32>
    %8 = arith.truncf %7 : vector<8x512xf32> to vector<8x512xbf16>
    %c0_6 = arith.constant 0 : index
    %c0_7 = arith.constant 0 : index
    %9 = vector.load %arg4[%c0_6, %c0_7] : memref<512x128xbf16, #tpu.memory_space<vmem>>, vector<512x128xbf16>
    %cst_8 = arith.constant dense<0.000000e+00> : vector<8x128xf32>
    %10 = tpu.matmul %8, %9, %cst_8 {dimension_numbers = #tpu.dot_dimension_numbers<[1], [0], [0], [1], [0, 0, 1, 1], [], []>} : vector<8x512xbf16>, vector<512x128xbf16>, vector<8x128xf32> -> vector<8x128xf32>
    %c0_9 = arith.constant 0 : index
    %c0_10 = arith.constant 0 : index
    %11 = vector.load %arg5[%c0_9, %c0_10] : memref<1x128xf32, #tpu.memory_space<vmem>>, vector<1x128xf32>
    %12 = vector.broadcast %11 : vector<1x128xf32> to vector<8x128xf32>
    %13 = arith.addf %10, %12 : vector<8x128xf32>
    %c0_11 = arith.constant 0 : index
    %c0_12 = arith.constant 0 : index
    %14 = vector.load %arg6[%c0_11, %c0_12] : memref<8x128xf32, #tpu.memory_space<vmem>>, vector<8x128xf32>
    %15 = arith.addf %13, %14 : vector<8x128xf32>
    %c0_13 = arith.constant 0 : index
    %c0_14 = arith.constant 0 : index
    %16 = vector.load %arg12[%c0_13, %c0_14] : memref<8x128xf32, #tpu.memory_space<vmem>>, vector<8x128xf32>
    tpu.vector_store %arg12[%c0_13, %c0_14], %15 {strides = array<i32>} : memref<8x128xf32, #tpu.memory_space<vmem>>, vector<8x128xf32>,
    %17 = arith.truncf %15 : vector<8x128xf32> to vector<8x128xbf16>
    %c0_15 = arith.constant 0 : index
    %c0_16 = arith.constant 0 : index
    %18 = vector.load %arg7[%c0_15, %c0_16] : memref<128x512xbf16, #tpu.memory_space<vmem>>, vector<128x512xbf16>
    %cst_17 = arith.constant dense<0.000000e+00> : vector<8x512xf32>
    %19 = tpu.matmul %17, %18, %cst_17 {dimension_numbers = #tpu.dot_dimension_numbers<[1], [0], [0], [1], [0, 0, 1, 1], [], []>} : vector<8x128xbf16>, vector<128x512xbf16>, vector<8x512xf32> -> vector<8x512xf32>
    %c0_18 = arith.constant 0 : index
    %c0_19 = arith.constant 0 : index
    %20 = vector.load %arg8[%c0_18, %c0_19] : memref<1x512xf32, #tpu.memory_space<vmem>>, vector<1x512xf32>
    %21 = vector.broadcast %20 : vector<1x512xf32> to vector<8x512xf32>
    %22 = arith.addf %19, %21 : vector<8x512xf32>
    %cst_20 = arith.constant 0.000000e+00 : f32
    %23 = vector.broadcast %cst_20 : f32 to vector<8x512xf32>
    %24 = arith.maximumf %22, %23 : vector<8x512xf32>
    %25 = arith.truncf %24 : vector<8x512xf32> to vector<8x512xbf16>
    %c0_21 = arith.constant 0 : index
    %c0_22 = arith.constant 0 : index
    %26 = vector.load %arg9[%c0_21, %c0_22] : memref<512x256xbf16, #tpu.memory_space<vmem>>, vector<512x256xbf16>
    %cst_23 = arith.constant dense<0.000000e+00> : vector<8x256xf32>
    %27 = tpu.matmul %25, %26, %cst_23 {dimension_numbers = #tpu.dot_dimension_numbers<[1], [0], [0], [1], [0, 0, 1, 1], [], []>} : vector<8x512xbf16>, vector<512x256xbf16>, vector<8x256xf32> -> vector<8x256xf32>
    %c0_24 = arith.constant 0 : index
    %c0_25 = arith.constant 0 : index
    %28 = vector.load %arg10[%c0_24, %c0_25] : memref<1x256xf32, #tpu.memory_space<vmem>>, vector<1x256xf32>
    %29 = vector.broadcast %28 : vector<1x256xf32> to vector<8x256xf32>
    %30 = arith.addf %27, %29 : vector<8x256xf32>
    %31 = arith.negf %30 : vector<8x256xf32>
    %32 = math.exp %31 : vector<8x256xf32>
    %cst_26 = arith.constant 1.000000e+00 : f32
    %33 = vector.broadcast %cst_26 : f32 to vector<8x256xf32>
    %34 = arith.addf %33, %32 : vector<8x256xf32>
    %35 = arith.divf %33, %34 : vector<8x256xf32>
    %c0_27 = arith.constant 0 : index
    %c0_28 = arith.constant 0 : index
    %36 = vector.load %arg11[%c0_27, %c0_28] : memref<8x256xf32, #tpu.memory_space<vmem>>, vector<8x256xf32>
    tpu.vector_store %arg11[%c0_27, %c0_28], %35 {strides = array<i32>} : memref<8x256xf32, #tpu.memory_space<vmem>>, vector<8x256xf32>,
    return
  }
  func.func @transform_0(%arg0: i32) -> (i32, i32) {
    %c0_i32 = arith.constant 0 : i32
    %c0_i32_0 = arith.constant 0 : i32
    return %arg0, %c0_i32 : i32, i32
  }
  func.func @transform_1(%arg0: i32) -> (i32, i32) {
    %c0_i32 = arith.constant 0 : i32
    %c0_i32_0 = arith.constant 0 : i32
    %c0_i32_1 = arith.constant 0 : i32
    return %c0_i32, %c0_i32_0 : i32, i32
  }
  func.func @transform_2(%arg0: i32) -> (i32, i32) {
    %c0_i32 = arith.constant 0 : i32
    %c0_i32_0 = arith.constant 0 : i32
    %c0_i32_1 = arith.constant 0 : i32
    return %c0_i32, %c0_i32_0 : i32, i32
  }
  func.func @transform_3(%arg0: i32) -> (i32, i32) {
    %c0_i32 = arith.constant 0 : i32
    %c0_i32_0 = arith.constant 0 : i32
    %c0_i32_1 = arith.constant 0 : i32
    return %c0_i32, %c0_i32_0 : i32, i32
  }
  func.func @transform_4(%arg0: i32) -> (i32, i32) {
    %c0_i32 = arith.constant 0 : i32
    %c0_i32_0 = arith.constant 0 : i32
    %c0_i32_1 = arith.constant 0 : i32
    return %c0_i32, %c0_i32_0 : i32, i32
  }
  func.func @transform_5(%arg0: i32) -> (i32, i32) {
    %c0_i32 = arith.constant 0 : i32
    %c0_i32_0 = arith.constant 0 : i32
    return %arg0, %c0_i32 : i32, i32
  }
  func.func @transform_6(%arg0: i32) -> (i32, i32) {
    %c0_i32 = arith.constant 0 : i32
    %c0_i32_0 = arith.constant 0 : i32
    %c0_i32_1 = arith.constant 0 : i32
    return %c0_i32, %c0_i32_0 : i32, i32
  }
  func.func @transform_7(%arg0: i32) -> (i32, i32) {
    %c0_i32 = arith.constant 0 : i32
    %c0_i32_0 = arith.constant 0 : i32
    %c0_i32_1 = arith.constant 0 : i32
    return %c0_i32, %c0_i32_0 : i32, i32
  }
  func.func @transform_8(%arg0: i32) -> (i32, i32) {
    %c0_i32 = arith.constant 0 : i32
    %c0_i32_0 = arith.constant 0 : i32
    %c0_i32_1 = arith.constant 0 : i32
    return %c0_i32, %c0_i32_0 : i32, i32
  }
  func.func @transform_9(%arg0: i32) -> (i32, i32) {
    %c0_i32 = arith.constant 0 : i32
    %c0_i32_0 = arith.constant 0 : i32
    %c0_i32_1 = arith.constant 0 : i32
    return %c0_i32, %c0_i32_0 : i32, i32
  }
  func.func @transform_10(%arg0: i32) -> (i32, i32) {
    %c0_i32 = arith.constant 0 : i32
    %c0_i32_0 = arith.constant 0 : i32
    return %arg0, %c0_i32 : i32, i32
  }
  func.func @transform_11(%arg0: i32) -> (i32, i32) {
    %c0_i32 = arith.constant 0 : i32
    %c0_i32_0 = arith.constant 0 : i32
    return %arg0, %c0_i32 : i32, i32
  }
}

</mosaic_0001>

<bundles_post_ra>
// kernel: tpu_custom_call.1
= control target key start
LH: loop header
LB: loop body
LE: loop exit
PB: predicated region body
PF: predicated region fallthrough
CT: control target
= control target key end

     0   :  { %17 = vsyncpa [#allocation3], 0  ;;  %s2681_s0 = inlined_call_operand.hbm [shape: bf16[8,256], index: 0, kind: input, shape index: {}]   ;;  %s2682_s1 = inlined_call_operand.hbm [shape: bf16[256,512], index: 1, kind: input, shape index: {}]   ;;  %s2683_s2 = inlined_call_operand.hbm [shape: f32[1,512], index: 2, kind: input, shape index: {}]   ;;  %s2684_s3 = inlined_call_operand.hbm [shape: bf16[512,128], index: 3, kind: input, shape index: {}]   ;;  %s2685_s4 = inlined_call_operand.hbm [shape: f32[1,128], index: 4, kind: input, shape index: {}]   ;;  %s2686_s5 = inlined_call_operand.vmem [shape: f32[8,128], index: 5, kind: input, shape index: {}]   ;;  %s2687_s6 = inlined_call_operand.hbm [shape: bf16[128,512], index: 6, kind: input, shape index: {}]   ;;  %s2688_s7 = inlined_call_operand.vmem [shape: f32[1,512], index: 7, kind: input, shape index: {}]   ;;  %s2689_s8 = inlined_call_operand.hbm [shape: bf16[512,256], index: 8, kind: input, shape index: {}]   ;;  %s2690_s9 = inlined_call_operand.vmem [shape: f32[1,256], index: 9, kind: input, shape index: {}]   ;;  %s2691_s10 = inlined_call_operand.hbm [shape: f32[8,256], index: 10, kind: output, shape index: {0}]   ;;  %s2692_s11 = inlined_call_operand.hbm [shape: f32[8,128], index: 11, kind: output, shape index: {1}]  }
   0x1   :  { %18 = vsyncpa [#allocation6], 0 }
   0x2   :  { %19 = vsyncpa [#allocation9], 0 }
   0x3   :  { %20 = vsyncpa [#allocation12], 0 }
   0x4   :  { %21 = vsyncpa [#allocation4], 0 }
   0x5   :  { %22 = vsyncpa [#allocation16], 0  ;;  %s2539_s17 = smov [#allocation5]  }
   0x6   :  { %s38_s18 = sshll.u32 %s2539_s17, 4  ;;  %s39_s18 = int_to_ptr.vmem [resolvable:$true] %s38_s18 }
   0x7   :  { %s2355_s19 = scalar_lea.vmem %s39_s18, 8192  ;;  %p2360_p1 = scmp.lt.s32.totalorder %s39_s18, %s39_s18 }
   0x8   :  { %p2356_p0 = scmp.ne.s32.totalorder %s39_s18, %s2355_s19  ;;  %p2361_p2 = scmp.lt.s32.totalorder %s2355_s19, %s2355_s19 }
   0xa   :  { %p2362_p3 = por %p2361_p2, %p2360_p1 }
   0xc   :  { %p2363_p4 = pnand %p2362_p3, %p2356_p0 }
   0xe   :  { %2366 = shalt.err (!%p2363_p4)
}
   0xf   :  { %s2540_s20 = smov 256   ;;  %s2541_s21 = smov 16  }
  0x10   :  { %44 = dma.hbm_to_vmem [thread:$0]  %s2682_s1, 8192, %s39_s18, [#allocation6], %s2540_s20, %s2540_s20, %s2541_s21  }
  0x11   :  { %s2542_s24 = smov [#allocation8]  }
  0x12   :  { %s60_s25 = sshll.u32 %s2542_s24, 4  ;;  %s61_s25 = int_to_ptr.vmem [resolvable:$true] %s60_s25 }
  0x13   :  { %s2375_s26 = scalar_lea.vmem %s61_s25, 4096  ;;  %p2380_p6 = scmp.lt.s32.totalorder %s61_s25, %s61_s25 }
  0x14   :  { %p2376_p5 = scmp.ne.s32.totalorder %s61_s25, %s2375_s26  ;;  %p2381_p7 = scmp.lt.s32.totalorder %s2375_s26, %s2375_s26 }
  0x16   :  { %p2382_p8 = por %p2381_p7, %p2380_p6 }
  0x18   :  { %p2383_p9 = pnand %p2382_p8, %p2376_p5 }
  0x1a   :  { %2386 = shalt.err (!%p2383_p9)
}
  0x1b   :  { %s2543_s27 = smov 64   ;;  %s2544_s28 = smov 4  }
  0x1c   :  { %66 = dma.hbm_to_vmem [thread:$0]  %s2684_s3, 4096, %s61_s25, [#allocation9], %s2543_s27, %s2543_s27, %s2544_s28  }
  0x1d   :  { %s2545_s12 = smov [#allocation11]   ;;  %s2546_s14 = smov [#allocation2]  }
  0x1e   :  { %s84_s13 = sshll.u32 %s2545_s12, 4  ;;  %s29_s1 = sshll.u32 %s2546_s14, 4  ;;  %s85_s13 = int_to_ptr.vmem [resolvable:$true] %s84_s13  ;;  %s30_s1 = int_to_ptr.vmem [resolvable:$true] %s29_s1 }
  0x1f   :  { %s2395_s15 = scalar_lea.vmem %s85_s13, 4096  ;;  %p2400_p11 = scmp.lt.s32.totalorder %s85_s13, %s85_s13 }
  0x20   :  { %p2396_p10 = scmp.ne.s32.totalorder %s85_s13, %s2395_s15  ;;  %p2401_p12 = scmp.lt.s32.totalorder %s2395_s15, %s2395_s15 }
  0x22   :  { %p2402_p13 = por %p2401_p12, %p2400_p11 }
  0x24   :  { %p2403_p0 = pnand %p2402_p13, %p2396_p10 }
  0x26   :  { %2406 = shalt.err (!%p2403_p0)
}
  0x27   :  { %90 = dma.hbm_to_vmem [thread:$0]  %s2687_s6, 4096, %s85_s13, [#allocation12], %s2540_s20, %s2540_s20, %s2541_s21  }
  0x28   :  { %s2415_s3 = scalar_lea.vmem %s30_s1, 128  ;;  %p2420_p2 = scmp.lt.s32.totalorder %s30_s1, %s30_s1 }
  0x29   :  { %p2416_p1 = scmp.ne.s32.totalorder %s30_s1, %s2415_s3  ;;  %p2421_p3 = scmp.lt.s32.totalorder %s2415_s3, %s2415_s3 }
  0x2b   :  { %p2422_p4 = por %p2421_p3, %p2420_p2 }
  0x2d   :  { %p2423_p5 = pnand %p2422_p4, %p2416_p1 }
  0x2f   :  { %2426 = shalt.err (!%p2423_p5)
}
  0x30   :  { %32 = dma.hbm_to_vmem [thread:$0]  %s2681_s0, 128, %s30_s1, [#allocation3]  }
  0x31   :  { %s2547_s22 = smov [#allocation7]   ;;  %s2548_s24 = smov [#allocation10]  }
  0x32   :  { %s51_s23 = sshll.u32 %s2547_s22, 4  ;;  %s73_s25 = sshll.u32 %s2548_s24, 4  ;;  %s52_s23 = int_to_ptr.vmem [resolvable:$true] %s51_s23  ;;  %s74_s25 = int_to_ptr.vmem [resolvable:$true] %s73_s25 }
  0x33   :  { %s2435_s26 = scalar_lea.vmem %s52_s23, 64  ;;  %p2440_p7 = scmp.lt.s32.totalorder %s52_s23, %s52_s23 }
  0x34   :  { %p2436_p6 = scmp.ne.s32.totalorder %s52_s23, %s2435_s26  ;;  %p2441_p8 = scmp.lt.s32.totalorder %s2435_s26, %s2435_s26 }
  0x36   :  { %p2442_p9 = por %p2441_p8, %p2440_p7 }
  0x38   :  { %p2443_p10 = pnand %p2442_p9, %p2436_p6 }
  0x3a   :  { %2446 = shalt.err (!%p2443_p10)
}
  0x3b   :  { %54 = dma.hbm_to_vmem [thread:$0]  %s2683_s2, 64, %s52_s23, [#allocation6]  }
  0x3c   :  { %s2455_s21 = scalar_lea.vmem %s74_s25, 16  ;;  %s2459_s0 = scalar_lea.vmem %s74_s25, 32 }
  0x3d   :  { %p2456_p11 = scmp.ne.s32.totalorder %s74_s25, %s2455_s21  ;;  %p2460_p12 = scmp.lt.s32.totalorder %s74_s25, %s74_s25 }
  0x3e   :  { %p2461_p13 = scmp.lt.s32.totalorder %s2459_s0, %s2455_s21 }
  0x40   :  { %p2462_p0 = por %p2461_p13, %p2460_p12 }
  0x42   :  { %p2463_p1 = pnand %p2462_p0, %p2456_p11 }
  0x44   :  { %2466 = shalt.err (!%p2463_p1)
}
  0x45   :  { %76 = dma.hbm_to_vmem [thread:$0]  %s2685_s4, 16, %s74_s25, [#allocation9]  }
  0x46   :  { %s2549_s29 = smov [#allocation13]  }
  0x47   :  { %s98_s30 = sshll.u32 %s2549_s29, 4  ;;  %s99_s30 = int_to_ptr.vmem [resolvable:$true] %s98_s30 }
  0x48   :  { %s2475_s12 = scalar_lea.vmem %s99_s30, 8192  ;;  %p2480_p3 = scmp.lt.s32.totalorder %s99_s30, %s99_s30 }
  0x49   :  { %p2476_p2 = scmp.ne.s32.totalorder %s99_s30, %s2475_s12  ;;  %p2481_p4 = scmp.lt.s32.totalorder %s2475_s12, %s2475_s12 }
  0x4b   :  { %p2482_p5 = por %p2481_p4, %p2480_p3 }
  0x4d   :  { %p2483_p6 = pnand %p2482_p5, %p2476_p2 }
  0x4f   :  { %2486 = shalt.err (!%p2483_p6)
}
  0x50   :  { %s2550_s2 = smov 128   ;;  %s2551_s13 = smov 8  }
  0x51   :  { %104 = dma.hbm_to_vmem [thread:$0]  %s2689_s8, 8192, %s99_s30, [#allocation12], %s2550_s2, %s2550_s2, %s2551_s13  }
  0x52   :  { %2527 = dma.done.wait [#allocation3], 128  }
  0x53   :  { %2528 = vsyncadd [#allocation3], 4294967168 }
  0x54   :  { %2529 = dma.done.wait [#allocation6], 8256  }
  0x55   :  { %2530 = vsyncadd [#allocation6], 4294959040 }
  0x56   :  { %2531 = dma.done.wait [#allocation9], 4112  }
  0x57   :  { %2532 = vsyncadd [#allocation9], 4294963184 }
  0x58   :  { %2533 = dma.done.wait [#allocation12], 12288  }
  0x59   :  { %2534 = vsyncadd [#allocation12], 4294955008  ;;  %v2065_v0 = vld [vmem:[#allocation5 + $0xe4] ss:$16 sps:$4 sm:$0xff]   ;;  %v2067_v1 = vld [vmem:[#allocation5 + $0xec] ss:$16 sps:$4 sm:$0xff]  }
  0x5a   :  { %543 = vmatprep.subr.bf16.mxu0 %v2065_v0  ;;  %v2069_v2 = vld [vmem:[#allocation5 + $0xe0] ss:$16 sps:$4 sm:$0xff]   ;;  %v2070_v3 = vld [vmem:[#allocation5 + $0xe8] ss:$16 sps:$4 sm:$0xff]   ;;  %584 = vmatprep.subr.bf16.mxu1 %v2067_v1  ;;  %v2071_v4 = vld [vmem:[#allocation5 + $0xc4] ss:$16 sps:$4 sm:$0xff]  }
  0x5b   :  { %544 = vmatpush1.bf16.msra.mxu0 %v2069_v2  ;;  %585 = vmatpush1.bf16.msra.mxu1 %v2070_v3  ;;  %v2073_v5 = vld [vmem:[#allocation5 + $0xcc] ss:$16 sps:$4 sm:$0xff]   ;;  %v2075_v6 = vld [vmem:[#allocation5 + $0xc0] ss:$16 sps:$4 sm:$0xff]   ;;  %v2076_v7 = vld [vmem:[#allocation5 + $0xc8] ss:$16 sps:$4 sm:$0xff]  }
  0x5c   :  { %545 = vmatprep.subr.bf16.mxu0 %v2071_v4  ;;  %586 = vmatprep.subr.bf16.mxu1 %v2073_v5  ;;  %v2077_v8 = vld [vmem:[#allocation5 + $0xa4] ss:$16 sps:$4 sm:$0xff]   ;;  %v2079_v9 = vld [vmem:[#allocation5 + $0xac] ss:$16 sps:$4 sm:$0xff]   ;;  %v2081_v10 = vld [vmem:[#allocation5 + $0xa0] ss:$16 sps:$4 sm:$0xff]  }
  0x5d   :  { %v2082_v11 = vld [vmem:[#allocation5 + $0xa8] ss:$16 sps:$4 sm:$0xff]   ;;  %v2083_v12 = vld [vmem:[#allocation5 + $0x84] ss:$16 sps:$4 sm:$0xff]   ;;  %v2085_v13 = vld [vmem:[#allocation5 + $0x8c] ss:$16 sps:$4 sm:$0xff]  }
  0x5e   :  { %v2087_v14 = vld [vmem:[#allocation5 + $0x80] ss:$16 sps:$4 sm:$0xff]   ;;  %v2088_v15 = vld [vmem:[#allocation5 + $0x88] ss:$16 sps:$4 sm:$0xff]   ;;  %v2089_v16 = vld [vmem:[#allocation5 + $0x64] ss:$16 sps:$4 sm:$0xff]  }
  0x5f   :  { %546 = vmatpush1.bf16.msra.mxu0 %v2075_v6  ;;  %587 = vmatpush1.bf16.msra.mxu1 %v2076_v7  ;;  %v2091_v17 = vld [vmem:[#allocation5 + $0x6c] ss:$16 sps:$4 sm:$0xff]   ;;  %v2093_v18 = vld [vmem:[#allocation5 + $0x60] ss:$16 sps:$4 sm:$0xff]   ;;  %v2094_v19 = vld [vmem:[#allocation5 + $0x68] ss:$16 sps:$4 sm:$0xff]  }
  0x60   :  { %547 = vmatprep.subr.bf16.mxu0 %v2077_v8  ;;  %588 = vmatprep.subr.bf16.mxu1 %v2079_v9  ;;  %v2095_v20 = vld [vmem:[#allocation5 + $0x44] ss:$16 sps:$4 sm:$0xff]   ;;  %v2097_v21 = vld [vmem:[#allocation5 + $0x4c] ss:$16 sps:$4 sm:$0xff]   ;;  %v2099_v22 = vld [vmem:[#allocation5 + $0x40] ss:$16 sps:$4 sm:$0xff]  }
  0x61   :  { %v2100_v23 = vld [vmem:[#allocation5 + $0x48] ss:$16 sps:$4 sm:$0xff]   ;;  %v2101_v24 = vld [vmem:[#allocation5 + $0x24] ss:$16 sps:$4 sm:$0xff]   ;;  %v2103_v25 = vld [vmem:[#allocation5 + $0x2c] ss:$16 sps:$4 sm:$0xff]  }
  0x62   :  { %v2105_v26 = vld [vmem:[#allocation5 + $0x20] ss:$16 sps:$4 sm:$0xff]   ;;  %v2106_v27 = vld [vmem:[#allocation5 + $0x28] ss:$16 sps:$4 sm:$0xff]   ;;  %v2107_v28 = vld [vmem:[#allocation5 + $0x4] ss:$16 sps:$4 sm:$0xff]  }
  0x63   :  { %548 = vmatpush1.bf16.msra.mxu0 %v2081_v10  ;;  %589 = vmatpush1.bf16.msra.mxu1 %v2082_v11  ;;  %v2109_v29 = vld [vmem:[#allocation5 + $0xc] ss:$16 sps:$4 sm:$0xff]   ;;  %v2111_v30 = vld [vmem:[#allocation5] ss:$16 sps:$4 sm:$0xff]   ;;  %v2112_v31 = vld [vmem:[#allocation5 + $0x8] ss:$16 sps:$4 sm:$0xff]  }
  0x64   :  { %549 = vmatprep.subr.bf16.mxu0 %v2083_v12  ;;  %590 = vmatprep.subr.bf16.mxu1 %v2085_v13  ;;  %v2113_v32 = vld [vmem:[#allocation5 + $0x1e4] ss:$16 sps:$4 sm:$0xff]   ;;  %v2115_v33 = vld [vmem:[#allocation5 + $0x1ec] ss:$16 sps:$4 sm:$0xff]   ;;  %v2117_v34 = vld [vmem:[#allocation5 + $0x1e0] ss:$16 sps:$4 sm:$0xff]  }
  0x65   :  { %v2118_v35 = vld [vmem:[#allocation5 + $0x1e8] ss:$16 sps:$4 sm:$0xff]   ;;  %v2119_v36 = vld [vmem:[#allocation5 + $0x1c4] ss:$16 sps:$4 sm:$0xff]   ;;  %v2121_v37 = vld [vmem:[#allocation5 + $0x1cc] ss:$16 sps:$4 sm:$0xff]  }
  0x66   :  { %v2123_v38 = vld [vmem:[#allocation5 + $0x1c0] ss:$16 sps:$4 sm:$0xff]   ;;  %v2124_v39 = vld [vmem:[#allocation5 + $0x1c8] ss:$16 sps:$4 sm:$0xff]   ;;  %v2125_v40 = vld [vmem:[#allocation5 + $0x1a4] ss:$16 sps:$4 sm:$0xff]  }
  0x67   :  { %550 = vmatpush1.bf16.msra.mxu0 %v2087_v14  ;;  %591 = vmatpush1.bf16.msra.mxu1 %v2088_v15  ;;  %v2127_v41 = vld [vmem:[#allocation5 + $0x1ac] ss:$16 sps:$4 sm:$0xff]   ;;  %v2129_v42 = vld [vmem:[#allocation5 + $0x1a0] ss:$16 sps:$4 sm:$0xff]   ;;  %v2130_v43 = vld [vmem:[#allocation5 + $0x1a8] ss:$16 sps:$4 sm:$0xff]  }
  0x68   :  { %551 = vmatprep.subr.bf16.mxu0 %v2089_v16  ;;  %592 = vmatprep.subr.bf16.mxu1 %v2091_v17  ;;  %v2131_v44 = vld [vmem:[#allocation5 + $0x184] ss:$16 sps:$4 sm:$0xff]   ;;  %v2133_v45 = vld [vmem:[#allocation5 + $0x18c] ss:$16 sps:$4 sm:$0xff]   ;;  %v2135_v46 = vld [vmem:[#allocation5 + $0x180] ss:$16 sps:$4 sm:$0xff]  }
  0x69   :  { %v129_v47 = vld [vmem:[#allocation2] sm:$0xff]  ;;  %v2137_v50 = vld [vmem:[#allocation5 + $0x164] ss:$16 sps:$4 sm:$0xff]   ;;  %v2141_v52 = vld [vmem:[#allocation5 + $0x160] ss:$16 sps:$4 sm:$0xff]  }
  0x6a   :  { %v2136_v48 = vld [vmem:[#allocation5 + $0x188] ss:$16 sps:$4 sm:$0xff]   ;;  %v1809_v49 = vcombine.high %v129_v47, %v129_v47  ;;  %v2139_v51 = vld [vmem:[#allocation5 + $0x16c] ss:$16 sps:$4 sm:$0xff]   ;;  %v2143_v54 = vld [vmem:[#allocation5 + $0x144] ss:$16 sps:$4 sm:$0xff]   ;;  %v1808_v5 = vcombine.low %v129_v47, %v129_v47 }
  0x6b   :  { %552 = vmatpush1.bf16.msra.mxu0 %v2093_v18  ;;  %593 = vmatpush1.bf16.msra.mxu1 %v2094_v19  ;;  %v2142_v53 = vld [vmem:[#allocation5 + $0x168] ss:$16 sps:$4 sm:$0xff]   ;;  %v2145_v55 = vld [vmem:[#allocation5 + $0x14c] ss:$16 sps:$4 sm:$0xff]   ;;  %v2147_v56 = vld [vmem:[#allocation5 + $0x140] ss:$16 sps:$4 sm:$0xff]  }
  0x6c   :  { %553 = vmatprep.subr.bf16.mxu0 %v2095_v20  ;;  %594 = vmatprep.subr.bf16.mxu1 %v2097_v21  ;;  %v2148_v57 = vld [vmem:[#allocation5 + $0x148] ss:$16 sps:$4 sm:$0xff]   ;;  %v2149_v58 = vld [vmem:[#allocation5 + $0x124] ss:$16 sps:$4 sm:$0xff]   ;;  %v2151_v59 = vld [vmem:[#allocation5 + $0x12c] ss:$16 sps:$4 sm:$0xff]  }
  0x6d   :  { %575 = vmatprep.mubr.bf16.mxu0 %v1809_v49  ;;  %616 = vmatprep.mubr.bf16.mxu1 %v1809_v49  ;;  %v2153_v60 = vld [vmem:[#allocation5 + $0x120] ss:$16 sps:$4 sm:$0xff]   ;;  %v2154_v61 = vld [vmem:[#allocation5 + $0x128] ss:$16 sps:$4 sm:$0xff]   ;;  %v2155_v62 = vld [vmem:[#allocation5 + $0x104] ss:$16 sps:$4 sm:$0xff]  }
  0x6e   :  { %v2157_v63 = vld [vmem:[#allocation5 + $0x10c] ss:$16 sps:$4 sm:$0xff]   ;;  %v2159_v0 = vld [vmem:[#allocation5 + $0x100] ss:$16 sps:$4 sm:$0xff]   ;;  %v2160_v1 = vld [vmem:[#allocation5 + $0x108] ss:$16 sps:$4 sm:$0xff]  }
  0x6f   :  { %554 = vmatpush1.bf16.msra.mxu0 %v2099_v22  ;;  %595 = vmatpush1.bf16.msra.mxu1 %v2100_v23  ;;  %v2163_v2 = vld [vmem:[#allocation8 + $0x78] sm:$0xff]   ;;  %v2167_v7 = vld [vmem:[#allocation8 + $0x70] sm:$0xff]   ;;  %v2171_v11 = vld [vmem:[#allocation8 + $0x68] sm:$0xff]  }
  0x70   :  { %555 = vmatprep.subr.bf16.mxu0 %v2101_v24  ;;  %596 = vmatprep.subr.bf16.mxu1 %v2103_v25  ;;  %v2164_v3 = vld [vmem:[#allocation8 + $0xf8] sm:$0xff]   ;;  %v2168_v8 = vld [vmem:[#allocation8 + $0xf0] sm:$0xff]   ;;  %v2172_v12 = vld [vmem:[#allocation8 + $0xe8] sm:$0xff]  }
  0x71   :  { %v2165_v4 = vld [vmem:[#allocation8 + $0x38] sm:$0xff]   ;;  %v2169_v9 = vld [vmem:[#allocation8 + $0x30] sm:$0xff]   ;;  %v2173_v13 = vld [vmem:[#allocation8 + $0x28] sm:$0xff]  }
  0x72   :  { %v2166_v6 = vld [vmem:[#allocation8 + $0xb8] sm:$0xff]   ;;  %v2170_v10 = vld [vmem:[#allocation8 + $0xb0] sm:$0xff]   ;;  %v2174_v14 = vld [vmem:[#allocation8 + $0xa8] sm:$0xff]  }
  0x73   :  { %556 = vmatpush1.bf16.msra.mxu0 %v2105_v26  ;;  %597 = vmatpush1.bf16.msra.mxu1 %v2106_v27  ;;  %v2175_v15 = vld [vmem:[#allocation8 + $0x60] sm:$0xff]   ;;  %v2179_v19 = vld [vmem:[#allocation8 + $0x58] sm:$0xff]   ;;  %v2183_v23 = vld [vmem:[#allocation8 + $0x50] sm:$0xff]  }
  0x74   :  { %557 = vmatprep.subr.bf16.mxu0 %v2107_v28  ;;  %598 = vmatprep.subr.bf16.mxu1 %v2109_v29  ;;  %v2176_v16 = vld [vmem:[#allocation8 + $0xe0] sm:$0xff]   ;;  %v2180_v20 = vld [vmem:[#allocation8 + $0xd8] sm:$0xff]   ;;  %v2184_v24 = vld [vmem:[#allocation8 + $0xd0] sm:$0xff]  }
  0x75   :  { %v2177_v17 = vld [vmem:[#allocation8 + $0x20] sm:$0xff]   ;;  %v2181_v21 = vld [vmem:[#allocation8 + $0x18] sm:$0xff]   ;;  %v2185_v25 = vld [vmem:[#allocation8 + $0x10] sm:$0xff]  }
  0x76   :  { %v2178_v18 = vld [vmem:[#allocation8 + $0xa0] sm:$0xff]   ;;  %v2182_v22 = vld [vmem:[#allocation8 + $0x98] sm:$0xff]   ;;  %v2186_v26 = vld [vmem:[#allocation8 + $0x90] sm:$0xff]  }
  0x77   :  { %558 = vmatpush1.bf16.msra.mxu0 %v2111_v30  ;;  %599 = vmatpush1.bf16.msra.mxu1 %v2112_v31  ;;  %v2187_v27 = vld [vmem:[#allocation8 + $0x48] sm:$0xff]   ;;  %v2191_v31 = vld [vmem:[#allocation8 + $0x40] sm:$0xff]  }
  0x78   :  { %559 = vmatprep.subr.bf16.mxu0 %v2113_v32  ;;  %600 = vmatprep.subr.bf16.mxu1 %v2115_v33  ;;  %v2188_v28 = vld [vmem:[#allocation8 + $0xc8] sm:$0xff]   ;;  %v2192_v32 = vld [vmem:[#allocation8 + $0xc0] sm:$0xff]  }
  0x79   :  { %v2189_v29 = vld [vmem:[#allocation8 + $0x8] sm:$0xff]   ;;  %v2193_v33 = vld [vmem:[#allocation8] sm:$0xff]  }
  0x7a   :  { %v2190_v30 = vld [vmem:[#allocation8 + $0x88] sm:$0xff]  }
  0x7b   :  { %560 = vmatpush2.bf16.msra.mxu0 %v2117_v34  ;;  %601 = vmatpush2.bf16.msra.mxu1 %v2118_v35  ;;  %v2194_v34 = vld [vmem:[#allocation8 + $0x80] sm:$0xff]  }
  0x7c   :  { %561 = vmatprep.subr.bf16.mxu0 %v2119_v36  ;;  %602 = vmatprep.subr.bf16.mxu1 %v2121_v37  ;;  %v2197_v35 = vld [vmem:[#allocation11 + $0xe4] ss:$16 sps:$4 sm:$0xff]   ;;  %v2200_v36 = vld [vmem:[#allocation11 + $0xec] ss:$16 sps:$4 sm:$0xff]   ;;  %v196_v37 = vlaneseq }
  0x7f   :  { %562 = vmatpush2.bf16.msra.mxu0 %v2123_v38  ;;  %603 = vmatpush2.bf16.msra.mxu1 %v2124_v39  ;;  %v2642_v38 = vshrl.u32 %v196_v37, 7 }
  0x80   :  { %563 = vmatprep.subr.bf16.mxu0 %v2125_v40  ;;  %604 = vmatprep.subr.bf16.mxu1 %v2127_v41  ;;  %v194_v41 = vld [vmem:[#allocation7] sm:$0xf] }
  0x81   :  { %v2645_v39 = vsub.s32 0, %v2642_v38  ;;  %v206_v40 = vsub.s32 2, %v2642_v38 }
  0x83   :  { %564 = vmatpush2.bf16.msra.mxu0 %v2129_v42  ;;  %605 = vmatpush2.bf16.msra.mxu1 %v2130_v43  ;;  %v2649_v42 = vsub.s32 1, %v2642_v38  ;;  %v210_v43 = vsub.s32 3, %v2642_v38 }
  0x84   :  { %565 = vmatprep.subr.bf16.mxu0 %v2131_v44  ;;  %606 = vmatprep.subr.bf16.mxu1 %v2133_v45  ;;  %v199_v44 = vrot.slane %v194_v41, %v2645_v39  ;;  %v207_v45 = vrot.slane %v194_v41, %v206_v40 }
  0x85   :  { %v211_v47 = vrot.slane %v194_v41, %v210_v43 }
  0x87   :  { %566 = vmatpush2.bf16.msra.mxu0 %v2135_v46  ;;  %607 = vmatpush2.bf16.msra.mxu1 %v2136_v48  ;;  %v203_v46 = vrot.slane %v194_v41, %v2649_v42 }
  0x88   :  { %567 = vmatprep.subr.bf16.mxu0 %v2137_v50  ;;  %608 = vmatprep.subr.bf16.mxu1 %v2139_v51 }
  0x8b   :  { %568 = vmatpush2.bf16.msra.mxu0 %v2141_v52  ;;  %609 = vmatpush2.bf16.msra.mxu1 %v2142_v53 }
  0x8c   :  { %569 = vmatprep.subr.bf16.mxu0 %v2143_v54  ;;  %610 = vmatprep.subr.bf16.mxu1 %v2145_v55 }
  0x8f   :  { %570 = vmatpush2.bf16.msra.mxu0 %v2147_v56  ;;  %611 = vmatpush2.bf16.msra.mxu1 %v2148_v57 }
  0x90   :  { %571 = vmatprep.subr.bf16.mxu0 %v2149_v58  ;;  %612 = vmatprep.subr.bf16.mxu1 %v2151_v59 }
  0x93   :  { %572 = vmatpush2.bf16.msra.mxu0 %v2153_v60  ;;  %613 = vmatpush2.bf16.msra.mxu1 %v2154_v61 }
  0x94   :  { %573 = vmatprep.subr.bf16.mxu0 %v2155_v62  ;;  %614 = vmatprep.subr.bf16.mxu1 %v2157_v63 }
  0x97   :  { %574 = vmatpush2.bf16.msra.mxu0 %v2159_v0  ;;  %615 = vmatpush2.bf16.msra.mxu1 %v2160_v1 }
  0x98   :  { %2005 = vmatprep.subr.bf16.mxu0 %v2163_v2  ;;  %2027 = vmatprep.subr.bf16.mxu1 %v2164_v3  ;;  %v2195_v3 = vld [vmem:[#allocation11 + $0xe0] ss:$16 sps:$4 sm:$0xff]  }
  0x9a   :  { %576 = vmatmul.mubr.bf16.vlgmr.msra.gmra.mxu0 %v1808_v5  ;;  %617 = vmatmul.mubr.bf16.vlgmr.msra.gmra.mxu1 %v1808_v5 }
  0x9b   :  { %2006 = vmatpush3.bf16.msra.mxu0 %v2165_v4  ;;  %2028 = vmatpush3.bf16.msra.mxu1 %v2166_v6  ;;  %v2198_v4 = vld [vmem:[#allocation11 + $0xe8] ss:$16 sps:$4 sm:$0xff]   ;;  %v2203_v6 = vld [vmem:[#allocation11 + $0xc4] ss:$16 sps:$4 sm:$0xff]  }
  0x9c   :  { %2007 = vmatprep.subr.bf16.mxu0 %v2167_v7  ;;  %2029 = vmatprep.subr.bf16.mxu1 %v2168_v8  ;;  %v2206_v7 = vld [vmem:[#allocation11 + $0xcc] ss:$16 sps:$4 sm:$0xff]   ;;  %v2201_v8 = vld [vmem:[#allocation11 + $0xc0] ss:$16 sps:$4 sm:$0xff]  }
  0x9f   :  { %2008 = vmatpush3.bf16.msra.mxu0 %v2169_v9  ;;  %2030 = vmatpush3.bf16.msra.mxu1 %v2170_v10  ;;  %v2204_v9 = vld [vmem:[#allocation11 + $0xc8] ss:$16 sps:$4 sm:$0xff]   ;;  %v2209_v10 = vld [vmem:[#allocation11 + $0xa4] ss:$16 sps:$4 sm:$0xff]  }
  0xa0   :  { %2009 = vmatprep.subr.bf16.mxu0 %v2171_v11  ;;  %2031 = vmatprep.subr.bf16.mxu1 %v2172_v12  ;;  %v2212_v11 = vld [vmem:[#allocation11 + $0xac] ss:$16 sps:$4 sm:$0xff]   ;;  %v2207_v12 = vld [vmem:[#allocation11 + $0xa0] ss:$16 sps:$4 sm:$0xff]  }
  0xa3   :  { %2010 = vmatpush3.bf16.msra.mxu0 %v2173_v13  ;;  %2032 = vmatpush3.bf16.msra.mxu1 %v2174_v14  ;;  %v2210_v13 = vld [vmem:[#allocation11 + $0xa8] ss:$16 sps:$4 sm:$0xff]   ;;  %v2215_v14 = vld [vmem:[#allocation11 + $0x84] ss:$16 sps:$4 sm:$0xff]  }
  0xa4   :  { %2011 = vmatprep.subr.bf16.mxu0 %v2175_v15  ;;  %2033 = vmatprep.subr.bf16.mxu1 %v2176_v16  ;;  %v2218_v15 = vld [vmem:[#allocation11 + $0x8c] ss:$16 sps:$4 sm:$0xff]   ;;  %v2213_v16 = vld [vmem:[#allocation11 + $0x80] ss:$16 sps:$4 sm:$0xff]  }
  0xa7   :  { %2012 = vmatpush3.bf16.msra.mxu0 %v2177_v17  ;;  %2034 = vmatpush3.bf16.msra.mxu1 %v2178_v18  ;;  %v2216_v17 = vld [vmem:[#allocation11 + $0x88] ss:$16 sps:$4 sm:$0xff]   ;;  %v2221_v18 = vld [vmem:[#allocation11 + $0x64] ss:$16 sps:$4 sm:$0xff]  }
  0xa8   :  { %2013 = vmatprep.subr.bf16.mxu0 %v2179_v19  ;;  %2035 = vmatprep.subr.bf16.mxu1 %v2180_v20  ;;  %v2224_v19 = vld [vmem:[#allocation11 + $0x6c] ss:$16 sps:$4 sm:$0xff]   ;;  %v2219_v20 = vld [vmem:[#allocation11 + $0x60] ss:$16 sps:$4 sm:$0xff]  }
  0xab   :  { %2014 = vmatpush3.bf16.msra.mxu0 %v2181_v21  ;;  %2036 = vmatpush3.bf16.msra.mxu1 %v2182_v22  ;;  %v2222_v21 = vld [vmem:[#allocation11 + $0x68] ss:$16 sps:$4 sm:$0xff]   ;;  %v2227_v22 = vld [vmem:[#allocation11 + $0x44] ss:$16 sps:$4 sm:$0xff]  }
  0xac   :  { %2015 = vmatprep.subr.bf16.mxu0 %v2183_v23  ;;  %2037 = vmatprep.subr.bf16.mxu1 %v2184_v24  ;;  %v2230_v23 = vld [vmem:[#allocation11 + $0x4c] ss:$16 sps:$4 sm:$0xff]   ;;  %v2225_v24 = vld [vmem:[#allocation11 + $0x40] ss:$16 sps:$4 sm:$0xff]  }
  0xaf   :  { %2016 = vmatpush3.bf16.msra.mxu0 %v2185_v25  ;;  %2038 = vmatpush3.bf16.msra.mxu1 %v2186_v26  ;;  %v2228_v25 = vld [vmem:[#allocation11 + $0x48] ss:$16 sps:$4 sm:$0xff]   ;;  %v2233_v26 = vld [vmem:[#allocation11 + $0x24] ss:$16 sps:$4 sm:$0xff]  }
  0xb0   :  { %2017 = vmatprep.subr.bf16.mxu0 %v2187_v27  ;;  %2039 = vmatprep.subr.bf16.mxu1 %v2188_v28  ;;  %v2236_v27 = vld [vmem:[#allocation11 + $0x2c] ss:$16 sps:$4 sm:$0xff]   ;;  %v2231_v28 = vld [vmem:[#allocation11 + $0x20] ss:$16 sps:$4 sm:$0xff]  }
  0xb3   :  { %2018 = vmatpush3.bf16.msra.mxu0 %v2189_v29  ;;  %2040 = vmatpush3.bf16.msra.mxu1 %v2190_v30  ;;  %v2234_v29 = vld [vmem:[#allocation11 + $0x28] ss:$16 sps:$4 sm:$0xff]   ;;  %v2239_v30 = vld [vmem:[#allocation11 + $0x4] ss:$16 sps:$4 sm:$0xff]  }
  0xb4   :  { %2019 = vmatprep.subr.bf16.mxu0 %v2191_v31  ;;  %2041 = vmatprep.subr.bf16.mxu1 %v2192_v32  ;;  %v2242_v31 = vld [vmem:[#allocation11 + $0xc] ss:$16 sps:$4 sm:$0xff]   ;;  %v2237_v32 = vld [vmem:[#allocation11] ss:$16 sps:$4 sm:$0xff]  }
  0xb7   :  { %2020 = vmatpush3.bf16.msra.mxu0 %v2193_v33  ;;  %2042 = vmatpush3.bf16.msra.mxu1 %v2194_v34  ;;  %v2240_v33 = vld [vmem:[#allocation11 + $0x8] ss:$16 sps:$4 sm:$0xff]   ;;  %v2552_v34 = vmov 0  }
  0xb8   :  { %1194 = vmatprep.subr.bf16.mxu0 %v2197_v35  ;;  %1235 = vmatprep.subr.bf16.mxu1 %v2200_v36  ;;  %v2245_v35 = vld [vmem:[#allocation13 + $0x74] ss:$8 sps:$4 sm:$0xff]  }
  0xb9   :  { %v2248_v36 = vld [vmem:[#allocation13 + $0x174] ss:$8 sps:$4 sm:$0xff]  }
 0x15a   :  { %v577_v48 = vpop.f32.mrf.mxu0  ;;  %v618_v49 = vpop.f32.mrf.mxu1 }
 0x15b   :  { %v578_v50 = vadd.f32 %v577_v48, %v199_v44  ;;  %v619_v51 = vadd.f32 %v618_v49, %v207_v45  ;;  %v1874_v44 = vld [vmem:[#allocation10] ss:$0 sm:$0xff] }
 0x15c   :  { %v579_v52 = vpop.f32.mrf.mxu0  ;;  %v620_v53 = vpop.f32.mrf.mxu1 }
 0x15d   :  { %v627_v54 = vmax.f32 %v619_v51, 0.0  ;;  %v580_v55 = vadd.f32 %v579_v52, %v203_v46  ;;  %v621_v56 = vadd.f32 %v620_v53, %v211_v47  ;;  %v625_v57 = vmax.f32 %v578_v50, 0.0  ;;  %v976_v52 = vld [vmem:[%s2686_s5] sm:$0xff] }
 0x15e   :  { %v581_v58 = vpop.f32.mrf.mxu0  ;;  %v622_v59 = vpop.f32.mrf.mxu1 }
 0x15f   :  { %v626_v60 = vmax.f32 %v580_v55, 0.0  ;;  %v628_v61 = vmax.f32 %v621_v56, 0.0  ;;  %v631_v62 = vpack.c.bf16 %v627_v54, %v627_v54  ;;  %v629_v5 = vpack.c.bf16 %v625_v57, %v625_v57  ;;  %v2243_v57 = vld [vmem:[#allocation13 + $0x70] ss:$8 sps:$4 sm:$0xff]  }
 0x160   :  { %v582_v63 = vpop.f32.mrf.mxu0  ;;  %v623_v0 = vpop.f32.mrf.mxu1  ;;  %v2246_v58 = vld [vmem:[#allocation13 + $0x170] ss:$8 sps:$4 sm:$0xff]  }
 0x161   :  { %v630_v1 = vpack.c.bf16 %v626_v60, %v626_v60  ;;  %v632_v2 = vpack.c.bf16 %v628_v61, %v628_v61  ;;  %v2251_v60 = vld [vmem:[#allocation13 + $0x64] ss:$8 sps:$4 sm:$0xff]   ;;  %v2252_v63 = vld [vmem:[#allocation13 + $0x160] ss:$8 sps:$4 sm:$0xff]   ;;  %v2257_v0 = vld [vmem:[#allocation13 + $0x54] ss:$8 sps:$4 sm:$0xff]  }
 0x162   :  { %v2254_v61 = vld [vmem:[#allocation13 + $0x164] ss:$8 sps:$4 sm:$0xff]  }
 0x163   :  { %928 = vmatprep.mubr.bf16.mxu0 %v630_v1  ;;  %968 = vmatprep.mubr.bf16.mxu1 %v632_v2  ;;  %v2260_v1 = vld [vmem:[#allocation13 + $0x154] ss:$8 sps:$4 sm:$0xff]   ;;  %v2255_v2 = vld [vmem:[#allocation13 + $0x50] ss:$8 sps:$4 sm:$0xff]  }
 0x164   :  { %929 = vmatmul.mubr.bf16.vlgmr.msra.gmra.mxu0 %v629_v5  ;;  %969 = vmatmul.mubr.bf16.vlgmr.msra.gmra.mxu1 %v631_v62  ;;  %v2249_v62 = vld [vmem:[#allocation13 + $0x60] ss:$8 sps:$4 sm:$0xff]   ;;  %v2266_v5 = vld [vmem:[#allocation13 + $0x144] ss:$8 sps:$4 sm:$0xff]  }
 0x165   :  { %1195 = vmatpush1.bf16.msra.mxu0 %v2195_v3  ;;  %1236 = vmatpush1.bf16.msra.mxu1 %v2198_v4  ;;  %v2258_v3 = vld [vmem:[#allocation13 + $0x150] ss:$8 sps:$4 sm:$0xff]   ;;  %v2263_v4 = vld [vmem:[#allocation13 + $0x44] ss:$8 sps:$4 sm:$0xff]  }
 0x166   :  { %1196 = vmatprep.subr.bf16.mxu0 %v2203_v6  ;;  %1237 = vmatprep.subr.bf16.mxu1 %v2206_v7  ;;  %v2261_v6 = vld [vmem:[#allocation13 + $0x40] ss:$8 sps:$4 sm:$0xff]  }
 0x167   :  { %1226 = vmatprep.mubr.bf16.mxu0 %v2552_v34  ;;  %1267 = vmatprep.mubr.bf16.mxu1 %v2552_v34  ;;  %v2264_v7 = vld [vmem:[#allocation13 + $0x140] ss:$8 sps:$4 sm:$0xff]   ;;  %v2303_v34 = vld [vmem:[#allocation13 + $0xd0] ss:$8 sps:$4 sm:$0xff]  }
 0x169   :  { %1197 = vmatpush1.bf16.msra.mxu0 %v2201_v8  ;;  %1238 = vmatpush1.bf16.msra.mxu1 %v2204_v9  ;;  %v2269_v8 = vld [vmem:[#allocation13 + $0x34] ss:$8 sps:$4 sm:$0xff]  }
 0x16a   :  { %1198 = vmatprep.subr.bf16.mxu0 %v2209_v10  ;;  %1239 = vmatprep.subr.bf16.mxu1 %v2212_v11  ;;  %v2272_v9 = vld [vmem:[#allocation13 + $0x134] ss:$8 sps:$4 sm:$0xff]   ;;  %v2267_v10 = vld [vmem:[#allocation13 + $0x30] ss:$8 sps:$4 sm:$0xff]  }
 0x16b   :  { %v2270_v11 = vld [vmem:[#allocation13 + $0x130] ss:$8 sps:$4 sm:$0xff]  }
 0x16d   :  { %1199 = vmatpush1.bf16.msra.mxu0 %v2207_v12  ;;  %1240 = vmatpush1.bf16.msra.mxu1 %v2210_v13  ;;  %v2275_v12 = vld [vmem:[#allocation13 + $0x24] ss:$8 sps:$4 sm:$0xff]  }
 0x16e   :  { %1200 = vmatprep.subr.bf16.mxu0 %v2215_v14  ;;  %1241 = vmatprep.subr.bf16.mxu1 %v2218_v15  ;;  %v2278_v13 = vld [vmem:[#allocation13 + $0x124] ss:$8 sps:$4 sm:$0xff]   ;;  %v2273_v14 = vld [vmem:[#allocation13 + $0x20] ss:$8 sps:$4 sm:$0xff]  }
 0x16f   :  { %v2276_v15 = vld [vmem:[#allocation13 + $0x120] ss:$8 sps:$4 sm:$0xff]  }
 0x171   :  { %1201 = vmatpush1.bf16.msra.mxu0 %v2213_v16  ;;  %1242 = vmatpush1.bf16.msra.mxu1 %v2216_v17  ;;  %v2281_v16 = vld [vmem:[#allocation13 + $0x14] ss:$8 sps:$4 sm:$0xff]  }
 0x172   :  { %1202 = vmatprep.subr.bf16.mxu0 %v2221_v18  ;;  %1243 = vmatprep.subr.bf16.mxu1 %v2224_v19  ;;  %v2284_v17 = vld [vmem:[#allocation13 + $0x114] ss:$8 sps:$4 sm:$0xff]   ;;  %v2279_v18 = vld [vmem:[#allocation13 + $0x10] ss:$8 sps:$4 sm:$0xff]  }
 0x173   :  { %v2282_v19 = vld [vmem:[#allocation13 + $0x110] ss:$8 sps:$4 sm:$0xff]  }
 0x175   :  { %1203 = vmatpush1.bf16.msra.mxu0 %v2219_v20  ;;  %1244 = vmatpush1.bf16.msra.mxu1 %v2222_v21  ;;  %v2287_v20 = vld [vmem:[#allocation13 + $0x4] ss:$8 sps:$4 sm:$0xff]  }
 0x176   :  { %1204 = vmatprep.subr.bf16.mxu0 %v2227_v22  ;;  %1245 = vmatprep.subr.bf16.mxu1 %v2230_v23  ;;  %v2290_v21 = vld [vmem:[#allocation13 + $0x104] ss:$8 sps:$4 sm:$0xff]   ;;  %v2285_v22 = vld [vmem:[#allocation13] ss:$8 sps:$4 sm:$0xff]  }
 0x177   :  { %v2288_v23 = vld [vmem:[#allocation13 + $0x100] ss:$8 sps:$4 sm:$0xff]  }
 0x179   :  { %1205 = vmatpush1.bf16.msra.mxu0 %v2225_v24  ;;  %1246 = vmatpush1.bf16.msra.mxu1 %v2228_v25  ;;  %v2293_v24 = vld [vmem:[#allocation13 + $0xf4] ss:$8 sps:$4 sm:$0xff]  }
 0x17a   :  { %1206 = vmatprep.subr.bf16.mxu0 %v2233_v26  ;;  %1247 = vmatprep.subr.bf16.mxu1 %v2236_v27  ;;  %v2296_v25 = vld [vmem:[#allocation13 + $0x1f4] ss:$8 sps:$4 sm:$0xff]   ;;  %v2291_v26 = vld [vmem:[#allocation13 + $0xf0] ss:$8 sps:$4 sm:$0xff]  }
 0x17b   :  { %v2294_v27 = vld [vmem:[#allocation13 + $0x1f0] ss:$8 sps:$4 sm:$0xff]  }
 0x17d   :  { %1207 = vmatpush1.bf16.msra.mxu0 %v2231_v28  ;;  %1248 = vmatpush1.bf16.msra.mxu1 %v2234_v29  ;;  %v2299_v28 = vld [vmem:[#allocation13 + $0xe4] ss:$8 sps:$4 sm:$0xff]  }
 0x17e   :  { %1208 = vmatprep.subr.bf16.mxu0 %v2239_v30  ;;  %1249 = vmatprep.subr.bf16.mxu1 %v2242_v31  ;;  %v2302_v29 = vld [vmem:[#allocation13 + $0x1e4] ss:$8 sps:$4 sm:$0xff]   ;;  %v2297_v30 = vld [vmem:[#allocation13 + $0xe0] ss:$8 sps:$4 sm:$0xff]  }
 0x17f   :  { %v2300_v31 = vld [vmem:[#allocation13 + $0x1e0] ss:$8 sps:$4 sm:$0xff]  }
 0x181   :  { %1209 = vmatpush1.bf16.msra.mxu0 %v2237_v32  ;;  %1250 = vmatpush1.bf16.msra.mxu1 %v2240_v33  ;;  %v2305_v32 = vld [vmem:[#allocation13 + $0xd4] ss:$8 sps:$4 sm:$0xff]  }
 0x182   :  { %1680 = vmatprep.subr.bf16.mxu0 %v2245_v35  ;;  %1721 = vmatprep.subr.bf16.mxu1 %v2248_v36  ;;  %v2308_v33 = vld [vmem:[#allocation13 + $0x1d4] ss:$8 sps:$4 sm:$0xff]   ;;  %v2306_v35 = vld [vmem:[#allocation13 + $0x1d0] ss:$8 sps:$4 sm:$0xff]   ;;  %v2311_v36 = vld [vmem:[#allocation13 + $0xc4] ss:$8 sps:$4 sm:$0xff]  }
 0x224   :  { %v2021_v37 = vpop.f32.mrf.mxu0  ;;  %v2043_v41 = vpop.f32.mrf.mxu1 }
 0x226   :  { %v2022_v45 = vpop.f32.mrf.mxu0  ;;  %v2044_v46 = vpop.f32.mrf.mxu1 }
 0x227   :  { %v2023_v47 = vadd.f32 %v2022_v45, %v2021_v37  ;;  %v2045_v51 = vadd.f32 %v2044_v46, %v2043_v41  ;;  %v2314_v37 = vld [vmem:[#allocation13 + $0x1c4] ss:$8 sps:$4 sm:$0xff]   ;;  %v2309_v41 = vld [vmem:[#allocation13 + $0xc0] ss:$8 sps:$4 sm:$0xff]   ;;  %v2317_v45 = vld [vmem:[#allocation13 + $0xb4] ss:$8 sps:$4 sm:$0xff]  }
 0x228   :  { %v2024_v48 = vpop.f32.mrf.mxu0  ;;  %v2046_v49 = vpop.f32.mrf.mxu1  ;;  %v2320_v46 = vld [vmem:[#allocation13 + $0x1b4] ss:$8 sps:$4 sm:$0xff]  }
 0x229   :  { %v931_v50 = vadd.f32 %v2023_v47, %v1874_v44  ;;  %v2312_v44 = vld [vmem:[#allocation13 + $0x1c0] ss:$8 sps:$4 sm:$0xff]   ;;  %v2315_v47 = vld [vmem:[#allocation13 + $0xb0] ss:$8 sps:$4 sm:$0xff]   ;;  %v2323_v49 = vld [vmem:[#allocation13 + $0xa4] ss:$8 sps:$4 sm:$0xff]  }
 0x22a   :  { %v2025_v53 = vpop.f32.mrf.mxu0  ;;  %v2047_v54 = vpop.f32.mrf.mxu1  ;;  %v2318_v48 = vld [vmem:[#allocation13 + $0x1b0] ss:$8 sps:$4 sm:$0xff]  }
 0x22b   :  { %v971_v55 = vadd.f32 %v2045_v51, %v931_v50  ;;  %v2326_v50 = vld [vmem:[#allocation13 + $0x1a4] ss:$8 sps:$4 sm:$0xff]   ;;  %v2321_v51 = vld [vmem:[#allocation13 + $0xa0] ss:$8 sps:$4 sm:$0xff]   ;;  %v2329_v53 = vld [vmem:[#allocation13 + $0x94] ss:$8 sps:$4 sm:$0xff]  }
 0x22c   :  { %v2332_v54 = vld [vmem:[#allocation13 + $0x194] ss:$8 sps:$4 sm:$0xff]  }
 0x22d   :  { %v977_v56 = vadd.f32 %v976_v52, %v971_v55  ;;  %v2324_v52 = vld [vmem:[#allocation13 + $0x1a0] ss:$8 sps:$4 sm:$0xff]   ;;  %v2327_v55 = vld [vmem:[#allocation13 + $0x90] ss:$8 sps:$4 sm:$0xff]  }
 0x22f   :  { %v979_v59 = vpack.c.bf16 %v977_v56, %v977_v56  ;;  %978 = vst [vmem:[#allocation15] sm:$0xff] %v977_v56  ;;  %v2330_v56 = vld [vmem:[#allocation13 + $0x190] ss:$8 sps:$4 sm:$0xff]  }
 0x231   :  { %1227 = vmatmul.mubr.bf16.vlgmr.msra.gmra.mxu0 %v979_v59  ;;  %1268 = vmatmul.mubr.bf16.vlgmr.msra.gmra.mxu1 %v979_v59  ;;  %v2333_v59 = vld [vmem:[#allocation13 + $0x80] ss:$8 sps:$4 sm:$0xff]  }
 0x232   :  { %1681 = vmatpush1.bf16.msra.mxu0 %v2243_v57  ;;  %1722 = vmatpush1.bf16.msra.mxu1 %v2246_v58  ;;  %v2335_v57 = vld [vmem:[#allocation13 + $0x84] ss:$8 sps:$4 sm:$0xff]  }
 0x233   :  { %1682 = vmatprep.subr.bf16.mxu0 %v2251_v60  ;;  %1723 = vmatprep.subr.bf16.mxu1 %v2254_v61  ;;  %v2338_v58 = vld [vmem:[#allocation13 + $0x184] ss:$8 sps:$4 sm:$0xff]   ;;  %v2336_v60 = vld [vmem:[#allocation13 + $0x180] ss:$8 sps:$4 sm:$0xff]   ;;  %v1012_v61 = vld [vmem:[%s2688_s7] sm:$0xf] }
 0x234   :  { %s2553_s7 = smov [#allocation15]  }
 0x235   :  { %s1792_s16 = sshll.u32 %s2553_s7, 4  ;;  %s1793_s16 = int_to_ptr.vmem [resolvable:$true] %s1792_s16 }
 0x236   :  { %1683 = vmatpush1.bf16.msra.mxu0 %v2249_v62  ;;  %1724 = vmatpush1.bf16.msra.mxu1 %v2252_v63  ;;  %v1017_v62 = vrot.slane %v1012_v61, %v2645_v39  ;;  %v1025_v63 = vrot.slane %v1012_v61, %v206_v40  ;;  %s2487_s17 = scalar_lea.vmem %s1793_s16, 128  ;;  %p2492_p8 = scmp.lt.s32.totalorder %s1793_s16, %s1793_s16 }
 0x237   :  { %1684 = vmatprep.subr.bf16.mxu0 %v2257_v0  ;;  %1725 = vmatprep.subr.bf16.mxu1 %v2260_v1  ;;  %v1021_v0 = vrot.slane %v1012_v61, %v2649_v42  ;;  %v1029_v1 = vrot.slane %v1012_v61, %v210_v43  ;;  %p2488_p7 = scmp.ne.s32.totalorder %s1793_s16, %s2487_s17  ;;  %p2493_p9 = scmp.lt.s32.totalorder %s2487_s17, %s2487_s17 }
 0x239   :  { %p2494_p10 = por %p2493_p9, %p2492_p8 }
 0x23a   :  { %1685 = vmatpush1.bf16.msra.mxu0 %v2255_v2  ;;  %1726 = vmatpush1.bf16.msra.mxu1 %v2258_v3 }
 0x23b   :  { %1686 = vmatprep.subr.bf16.mxu0 %v2263_v4  ;;  %1727 = vmatprep.subr.bf16.mxu1 %v2266_v5  ;;  %p2495_p11 = pnand %p2494_p10, %p2488_p7 }
 0x23e   :  { %1687 = vmatpush1.bf16.msra.mxu0 %v2261_v6  ;;  %1728 = vmatpush1.bf16.msra.mxu1 %v2264_v7 }
 0x23f   :  { %1688 = vmatprep.subr.bf16.mxu0 %v2269_v8  ;;  %1729 = vmatprep.subr.bf16.mxu1 %v2272_v9 }
 0x242   :  { %1689 = vmatpush1.bf16.msra.mxu0 %v2267_v10  ;;  %1730 = vmatpush1.bf16.msra.mxu1 %v2270_v11 }
 0x243   :  { %1690 = vmatprep.subr.bf16.mxu0 %v2275_v12  ;;  %1731 = vmatprep.subr.bf16.mxu1 %v2278_v13 }
 0x246   :  { %1691 = vmatpush1.bf16.msra.mxu0 %v2273_v14  ;;  %1732 = vmatpush1.bf16.msra.mxu1 %v2276_v15 }
 0x247   :  { %1692 = vmatprep.subr.bf16.mxu0 %v2281_v16  ;;  %1733 = vmatprep.subr.bf16.mxu1 %v2284_v17 }
 0x24a   :  { %1693 = vmatpush1.bf16.msra.mxu0 %v2279_v18  ;;  %1734 = vmatpush1.bf16.msra.mxu1 %v2282_v19 }
 0x24b   :  { %1694 = vmatprep.subr.bf16.mxu0 %v2287_v20  ;;  %1735 = vmatprep.subr.bf16.mxu1 %v2290_v21 }
 0x24e   :  { %1695 = vmatpush1.bf16.msra.mxu0 %v2285_v22  ;;  %1736 = vmatpush1.bf16.msra.mxu1 %v2288_v23 }
 0x24f   :  { %1696 = vmatprep.subr.bf16.mxu0 %v2293_v24  ;;  %1737 = vmatprep.subr.bf16.mxu1 %v2296_v25 }
 0x252   :  { %1697 = vmatpush2.bf16.msra.mxu0 %v2291_v26  ;;  %1738 = vmatpush2.bf16.msra.mxu1 %v2294_v27 }
 0x253   :  { %1698 = vmatprep.subr.bf16.mxu0 %v2299_v28  ;;  %1739 = vmatprep.subr.bf16.mxu1 %v2302_v29 }
 0x256   :  { %1699 = vmatpush2.bf16.msra.mxu0 %v2297_v30  ;;  %1740 = vmatpush2.bf16.msra.mxu1 %v2300_v31 }
 0x257   :  { %1700 = vmatprep.subr.bf16.mxu0 %v2305_v32  ;;  %1741 = vmatprep.subr.bf16.mxu1 %v2308_v33 }
 0x25a   :  { %1701 = vmatpush2.bf16.msra.mxu0 %v2303_v34  ;;  %1742 = vmatpush2.bf16.msra.mxu1 %v2306_v35 }
 0x25b   :  { %1702 = vmatprep.subr.bf16.mxu0 %v2311_v36  ;;  %1743 = vmatprep.subr.bf16.mxu1 %v2314_v37 }
 0x25e   :  { %1703 = vmatpush2.bf16.msra.mxu0 %v2309_v41  ;;  %1744 = vmatpush2.bf16.msra.mxu1 %v2312_v44 }
 0x25f   :  { %1704 = vmatprep.subr.bf16.mxu0 %v2317_v45  ;;  %1745 = vmatprep.subr.bf16.mxu1 %v2320_v46 }
 0x262   :  { %1705 = vmatpush2.bf16.msra.mxu0 %v2315_v47  ;;  %1746 = vmatpush2.bf16.msra.mxu1 %v2318_v48 }
 0x263   :  { %1706 = vmatprep.subr.bf16.mxu0 %v2323_v49  ;;  %1747 = vmatprep.subr.bf16.mxu1 %v2326_v50 }
 0x266   :  { %1707 = vmatpush2.bf16.msra.mxu0 %v2321_v51  ;;  %1748 = vmatpush2.bf16.msra.mxu1 %v2324_v52 }
 0x267   :  { %1708 = vmatprep.subr.bf16.mxu0 %v2329_v53  ;;  %1749 = vmatprep.subr.bf16.mxu1 %v2332_v54 }
 0x26a   :  { %1709 = vmatpush2.bf16.msra.mxu0 %v2327_v55  ;;  %1750 = vmatpush2.bf16.msra.mxu1 %v2330_v56 }
 0x26b   :  { %1710 = vmatprep.subr.bf16.mxu0 %v2335_v57  ;;  %1751 = vmatprep.subr.bf16.mxu1 %v2338_v58 }
 0x26e   :  { %1711 = vmatpush2.bf16.msra.mxu0 %v2333_v59  ;;  %1752 = vmatpush2.bf16.msra.mxu1 %v2336_v60 }
 0x2f1   :  { %v1228_v2 = vpop.f32.mrf.mxu0  ;;  %v1269_v3 = vpop.f32.mrf.mxu1 }
 0x2f2   :  { %v1229_v4 = vadd.f32 %v1228_v2, %v1017_v62  ;;  %v1270_v5 = vadd.f32 %v1269_v3, %v1025_v63 }
 0x2f3   :  { %v1230_v6 = vpop.f32.mrf.mxu0  ;;  %v1271_v7 = vpop.f32.mrf.mxu1 }
 0x2f4   :  { %v1231_v8 = vadd.f32 %v1230_v6, %v1021_v0  ;;  %v1272_v9 = vadd.f32 %v1271_v7, %v1029_v1  ;;  %v1276_v10 = vmax.f32 %v1229_v4, 0.0  ;;  %v1278_v11 = vmax.f32 %v1270_v5, 0.0 }
 0x2f5   :  { %v1232_v12 = vpop.f32.mrf.mxu0  ;;  %v1273_v13 = vpop.f32.mrf.mxu1 }
 0x2f6   :  { %v1277_v14 = vmax.f32 %v1231_v8, 0.0  ;;  %v1279_v15 = vmax.f32 %v1272_v9, 0.0  ;;  %v1280_v38 = vpack.c.bf16 %v1276_v10, %v1276_v10  ;;  %v1282_v43 = vpack.c.bf16 %v1278_v11, %v1278_v11 }
 0x2f7   :  { %v1233_v40 = vpop.f32.mrf.mxu0  ;;  %v1274_v16 = vpop.f32.mrf.mxu1 }
 0x2f8   :  { %v1281_v17 = vpack.c.bf16 %v1277_v14, %v1277_v14  ;;  %v1283_v18 = vpack.c.bf16 %v1279_v15, %v1279_v15 }
 0x2fa   :  { %1712 = vmatprep.mubr.bf16.mxu0 %v1281_v17  ;;  %1753 = vmatprep.mubr.bf16.mxu1 %v1283_v18 }
 0x2fb   :  { %1713 = vmatmul.mubr.bf16.vlgmr.msra.gmra.mxu0 %v1280_v38  ;;  %1754 = vmatmul.mubr.bf16.vlgmr.msra.gmra.mxu1 %v1282_v43 }
 0x2fc   :  { %2498 = shalt.err (!%p2495_p11)
}
 0x2fd   :  { %1795 = dma.vmem_to_hbm [thread:$0]  %s1793_s16, 128, %s2692_s11, [#allocation16]   ;;  %v1348_v19 = vld [vmem:[%s2690_s9] sm:$0x3] }
 0x2fe   :  { %v1353_v20 = vrot.slane %v1348_v19, %v2645_v39  ;;  %v1357_v21 = vrot.slane %v1348_v19, %v2649_v42  ;;  %s2554_s9 = smov [#allocation14]  }
 0x2ff   :  { %s1782_s11 = sshll.u32 %s2554_s9, 4  ;;  %s1783_s11 = int_to_ptr.vmem [resolvable:$true] %s1782_s11 }
 0x300   :  { %s2507_s23 = scalar_lea.vmem %s1783_s11, 256  ;;  %p2512_p13 = scmp.lt.s32.totalorder %s1783_s11, %s1783_s11 }
 0x301   :  { %p2508_p12 = scmp.ne.s32.totalorder %s1783_s11, %s2507_s23  ;;  %p2513_p0 = scmp.lt.s32.totalorder %s2507_s23, %s2507_s23 }
 0x303   :  { %p2514_p1 = por %p2513_p0, %p2512_p13 }
 0x305   :  { %p2515_p2 = pnand %p2514_p1, %p2508_p12 }
 0x3bb   :  { %v1714_v22 = vpop.f32.mrf.mxu0  ;;  %v1755_v23 = vpop.f32.mrf.mxu1 }
 0x3bc   :  { %v1715_v24 = vadd.f32 %v1714_v22, %v1353_v20 }
 0x3bd   :  { %v1716_v25 = vpop.f32.mrf.mxu0  ;;  %v1757_v26 = vpop.f32.mrf.mxu1 }
 0x3be   :  { %v1756_v27 = vadd.f32 %v1755_v23, %v1715_v24  ;;  %v1717_v28 = vadd.f32 %v1716_v25, %v1357_v21 }
 0x3bf   :  { %v1718_v29 = vpop.f32.mrf.mxu0  ;;  %v1759_v30 = vpop.f32.mrf.mxu1 }
 0x3c0   :  { %v2003_v31 = vmul.f32 -1.442695, %v1756_v27  ;;  %v1758_v32 = vadd.f32 %v1757_v26, %v1717_v28 }
 0x3c1   :  { %v1719_v33 = vpop.f32.mrf.mxu0  ;;  %v1760_v34 = vpop.f32.mrf.mxu1 }
 0x3c2   :  { %2339 = vpow2.f32 %v2003_v31  ;;  %v2004_v35 = vmul.f32 -1.442695, %v1758_v32 }
 0x3c4   :  { %2341 = vpow2.f32 %v2004_v35 }
 0x3cf   :  { %v2340_v36 = vpop.eup %2339 }
 0x3d0   :  { %v1768_v39 = vadd.f32 1.0, %v2340_v36 }
 0x3d1   :  { %v2342_v37 = vpop.eup %2341 }
 0x3d2   :  { %2343 = vrcp.f32 %v1768_v39  ;;  %v1769_v42 = vadd.f32 1.0, %v2342_v37 }
 0x3d4   :  { %2345 = vrcp.f32 %v1769_v42 }
 0x3df   :  { %v2344_v41 = vpop.eup %2343 }
 0x3e0   :  { %1774 = vst [vmem:[#allocation14] sm:$0xff] %v2344_v41 }
 0x3e1   :  { %v2346_v44 = vpop.eup %2345 }
 0x3e2   :  { %1775 = vst [vmem:[#allocation14 + $0x8] sm:$0xff] %v2346_v44 }
 0x3e3   :  { %2518 = shalt.err (!%p2515_p2)
}
 0x3e4   :  { %1785 = dma.vmem_to_hbm [thread:$0]  %s1783_s11, 256, %s2691_s10, [#allocation4]  }
 0x3e5   :  { %2535 = dma.done.wait [#allocation4], 256  }
 0x3e6   :  { %2536 = vsyncadd [#allocation4], 4294967040 }
 0x3e7   :  { %2537 = dma.done.wait [#allocation16], 128  }
 0x3e8   :  { %2538 = vsyncadd [#allocation16], 4294967168 }
 0x3e9   :  { %1802 = vsyncpa [#allocation3], 1 }
 0x3ea   :  { %1803 = vsyncpa [#allocation6], 1 }
 0x3eb   :  { %1804 = vsyncpa [#allocation9], 1 }
 0x3ec   :  { %1805 = vsyncpa [#allocation12], 1 }
 0x3ed   :  { %1806 = vsyncpa [#allocation4], 1 }
 0x3ee   :  { %1807 = vsyncpa [#allocation16], 1 }

</bundles_post_ra>
